<compile_context>
chip_gen: v7x
topology: tpu7x:2x2x1
jax: 0.10.0
libtpu: 0.0.40
codegen_flags: <defaults>
</compile_context>

<pallas_src>
import functools

import jax
import jax.numpy as jnp
from jax.experimental import pallas as pl
from jax.experimental.pallas import tpu as pltpu

LEAKY_SLOPE = 0.01  # default negative_slope of nn.LeakyReLU()


def decoder_kernel(x_ref, w0_ref, b0_ref, w1_ref, b1_ref, o_ref, *, approx_recip):
    # linear_0 (MXU, f32 accumulate) + bias
    h = jnp.dot(x_ref[...], w0_ref[...], preferred_element_type=jnp.float32)
    h = h + b0_ref[...]
    # activation_0: LeakyReLU (VPU, f32)
    h = jnp.where(h > 0, h, LEAKY_SLOPE * h)
    # linear_1 — cast activations to the streamed weight dtype (no-op in f32 path)
    y = jnp.dot(h.astype(w1_ref.dtype), w1_ref[...], preferred_element_type=jnp.float32)
    y = y + b1_ref[...]
    # sigmoid: exp -> EUP; reciprocal -> EUP vrcp when approx=True.
    o_ref[...] = pl.reciprocal(1.0 + jnp.exp(-y), approx=approx_recip).astype(o_ref.dtype)


def _block_diag(w, pack, dtype):
    """Block-diagonal expansion of a (k, m) weight into (pack*k, pack*m)."""
    if pack == 1:
        return w.astype(dtype)
    k, m = w.shape
    bd = jnp.zeros((pack * k, pack * m), dtype)
    for r in range(pack):
        bd = bd.at[r * k:(r + 1) * k, r * m:(r + 1) * m].set(w.astype(dtype))
    return bd


def _pick_tile_rows(n_rows, row_in_bytes, row_out_bytes, row_tmp_bytes, sublane,
                    target_tile_bytes=2 << 20, vmem_budget=12 << 20, min_steps=4):
    """Row tile (in packed rows): ~2 MiB of x per step, capped so the double-buffered
    in/out tiles plus f32 temporaries stay under ~12 MiB (safe on v5e/v6e/v7x), and
    keeping >= min_steps grid steps when the batch allows (v7x megacore pipelining)."""
    tm = max(sublane, target_tile_bytes // max(row_in_bytes, 1))
    per_row = 2 * (row_in_bytes + row_out_bytes) + row_tmp_bytes
    tm = min(tm, max(sublane, vmem_budget // max(per_row, 1)))
    tm = min(tm, max(sublane, -(-n_rows // min_steps)))
    tm = max(sublane, (tm // sublane) * sublane)
    tm = min(tm, -(-n_rows // sublane) * sublane)
    return int(tm)


@functools.partial(jax.jit, static_argnames=("tile_rows", "approx_sigmoid"))
def decoder_forward(x, w0_t, b0, w1_t, b1, *, tile_rows=None, approx_sigmoid=True):
    """x: (N, C_in); w0_t: (C_in, H0); b0: (1, H0); w1_t: (H0, H1); b1: (1, H1).
    Streams x in its own dtype (f32 or bf16); accumulation is always f32."""
    n, c_in = x.shape
    h0 = w0_t.shape[1]
    h1 = w1_t.shape[1]
    out_dtype = x.dtype
    op_dtype = x.dtype           # weights follow the activation dtype (tiny, resident)
    elt = jnp.dtype(op_dtype).itemsize

    # Pack factor: largest of 8/4/2/1 dividing N (zero-copy row-major reshape).
    pack = 1
    for p in (8, 4, 2):
        if n % p == 0:
            pack = p
            break

    c_in_p, h0_p, h1_p = pack * c_in, pack * h0, pack * h1

    # Block-diagonal weights + tiled biases in the packed layout (built once per trace,
    # <= ~0.75 MiB — negligible vs. streaming x).
    w0_bd = _block_diag(w0_t, pack, op_dtype)
    w1_bd = _block_diag(w1_t, pack, op_dtype)
    b0_p = jnp.tile(b0.reshape(1, h0).astype(jnp.float32), (1, pack))
    b1_p = jnp.tile(b1.reshape(1, h1).astype(jnp.float32), (1, pack))
    x_p = x.reshape(n // pack, c_in_p) if pack > 1 else x

    n_rows = x_p.shape[0]
    sublane = 8 if elt == 4 else 16
    if tile_rows is None:
        row_in = c_in_p * elt
        row_out = h1_p * jnp.dtype(out_dtype).itemsize
        row_tmp = (h0_p + h1_p) * 4  # f32 temporaries inside the body
        tm = _pick_tile_rows(n_rows, row_in, row_out, row_tmp, sublane)
    else:
        tm = max(sublane, (int(tile_rows) // sublane) * sublane)

    grid = (pl.cdiv(n_rows, tm),)  # ragged last block handled by Pallas masking (no pad)

    cost = pl.CostEstimate(
        flops=int(2 * n * (c_in * h0 + h0 * h1)),
        transcendentals=int(n * h1),
        bytes_accessed=int(x.size * elt
                           + n * h1 * jnp.dtype(out_dtype).itemsize
                           + (w0_bd.size + w1_bd.size) * elt
                           + (b0_p.size + b1_p.size) * 4),
    )

    out_p = pl.pallas_call(
        functools.partial(decoder_kernel, approx_recip=approx_sigmoid),
        out_shape=jax.ShapeDtypeStruct((n_rows, h1_p), out_dtype),
        grid_spec=pltpu.PrefetchScalarGridSpec(
            num_scalar_prefetch=0,
            grid=grid,
            in_specs=[
                pl.BlockSpec((tm, c_in_p), lambda i: (i, 0)),    # x tile (streamed)
                pl.BlockSpec((c_in_p, h0_p), lambda i: (0, 0)),  # W0 block-diag (resident)
                pl.BlockSpec((1, h0_p), lambda i: (0, 0)),       # b0 tiled (resident, f32)
                pl.BlockSpec((h0_p, h1_p), lambda i: (0, 0)),    # W1 block-diag (resident)
                pl.BlockSpec((1, h1_p), lambda i: (0, 0)),       # b1 tiled (resident, f32)
            ],
            out_specs=pl.BlockSpec((tm, h1_p), lambda i: (i, 0)),
        ),
        compiler_params=pltpu.CompilerParams(
            dimension_semantics=("parallel",),
            vmem_limit_bytes=32 << 20,
        ),
        cost_estimate=cost,
    )(x_p, w0_bd, b0_p, w1_bd, b1_p)

    return out_p.reshape(n, h1)


def init_linear_params(key, in_features, out_features):
    """Deterministic init mimicking torch.nn.Linear uniform(-1/sqrt(fan_in), ...)."""
    kw, kb = jax.random.split(key)
    bound = 1.0 / jnp.sqrt(jnp.float32(in_features))
    w_t = jax.random.uniform(kw, (in_features, out_features), jnp.float32, -bound, bound)
    b = jax.random.uniform(kb, (1, out_features), jnp.float32, -bound, bound)
    return w_t, b


def reference_forward(x, w0_t, b0, w1_t, b1):
    x = x.astype(jnp.float32)
    h = jnp.dot(x, w0_t, precision=jax.lax.Precision.HIGHEST) + b0
    h = jnp.where(h > 0, h, LEAKY_SLOPE * h)
    y = jnp.dot(h, w1_t, precision=jax.lax.Precision.HIGHEST) + b1
    return jax.nn.sigmoid(y)


if __name__ == "__main__":
    # Decoder(32, 64, 16): linear_0: 32->64, LeakyReLU, linear_1: 64->16, sigmoid
    key = jax.random.PRNGKey(0)
    k_x, k_l0, k_l1 = jax.random.split(key, 3)

    in_ch, hid0, hid1 = 32, 64, 16
    w0_t, b0 = init_linear_params(k_l0, in_ch, hid0)
    w1_t, b1 = init_linear_params(k_l1, hid0, hid1)

    # 1) f32, batch divisible by 8 (full 8-row lane packing), exact sigmoid.
    x = jax.random.normal(k_x, (64, in_ch), jnp.float32)
    ref = reference_forward(x, w0_t, b0, w1_t, b1)
    out = jax.block_until_ready(
        decoder_forward(x, w0_t, b0, w1_t, b1, approx_sigmoid=False))
    assert out.shape == (64, hid1)
    err = float(jnp.max(jnp.abs(out - ref)))
    assert err < 2e-3, f"f32 exact path mismatch: max abs err {err}"

    # 2) f32, ragged batch (pack=4, non-divisible grid -> masked last block),
    #    default approx EUP sigmoid.
    x2 = jax.random.normal(k_x, (100, in_ch), jnp.float32)
    ref2 = reference_forward(x2, w0_t, b0, w1_t, b1)
    out2 = jax.block_until_ready(decoder_forward(x2, w0_t, b0, w1_t, b1))
    assert out2.shape == (100, hid1)
    err2 = float(jnp.max(jnp.abs(out2 - ref2)))
    assert err2 < 5e-3, f"f32 approx/ragged path mismatch: max abs err {err2}"

    # 3) Caller already holds bf16 activations: kernel streams bf16 end-to-end,
    #    f32 accumulation; no wrapper-side cast pass over x in the f32 cases above.
    x3 = jax.random.normal(k_x, (128, in_ch), jnp.float32)
    ref3 = reference_forward(x3, w0_t, b0, w1_t, b1)
    out3 = jax.block_until_ready(
        decoder_forward(x3.astype(jnp.bfloat16), w0_t, b0, w1_t, b1))
    assert out3.shape == (128, hid1)
    err3 = float(jnp.max(jnp.abs(out3.astype(jnp.float32) - ref3)))
    assert err3 < 3e-2, f"bf16 path mismatch: max abs err {err3}"

    print("KERNEL_OK")
</pallas_src>

<mosaic_0001>
module attributes {stable_mosaic.version = 11 : i64} {
  func.func @decoder_kernel(%arg0: i32, %arg1: memref<8x256xf32, #tpu.memory_space<vmem>>, %arg2: memref<256x512xf32, #tpu.memory_space<vmem>>, %arg3: memref<1x512xf32, #tpu.memory_space<vmem>>, %arg4: memref<512x128xf32, #tpu.memory_space<vmem>>, %arg5: memref<1x128xf32, #tpu.memory_space<vmem>>, %arg6: memref<8x128xf32, #tpu.memory_space<vmem>>) attributes {dimension_semantics = [#tpu.dimension_semantics<parallel>], iteration_bounds = array<i64: 1>, scalar_prefetch = 0 : i64, scratch_operands = 0 : i64, tpu.core_type = #tpu.core_type<tc>, window_params = [{transform_indices = @transform_0, window_bounds = array<i64: 8, 256>}, {pipeline_mode = #tpu.pipeline_mode<synchronous>, transform_indices = @transform_1, window_bounds = array<i64: 256, 512>}, {pipeline_mode = #tpu.pipeline_mode<synchronous>, transform_indices = @transform_2, window_bounds = array<i64: 1, 512>}, {pipeline_mode = #tpu.pipeline_mode<synchronous>, transform_indices = @transform_3, window_bounds = array<i64: 512, 128>}, {pipeline_mode = #tpu.pipeline_mode<synchronous>, transform_indices = @transform_4, window_bounds = array<i64: 1, 128>}, {transform_indices = @transform_5, window_bounds = array<i64: 8, 128>}]} {
    %c0 = arith.constant 0 : index
    %c0_0 = arith.constant 0 : index
    %0 = vector.load %arg1[%c0, %c0_0] : memref<8x256xf32, #tpu.memory_space<vmem>>, vector<8x256xf32>
    %c0_1 = arith.constant 0 : index
    %c0_2 = arith.constant 0 : index
    %1 = vector.load %arg2[%c0_1, %c0_2] : memref<256x512xf32, #tpu.memory_space<vmem>>, vector<256x512xf32>
    %cst = arith.constant dense<0.000000e+00> : vector<8x512xf32>
    %2 = tpu.matmul %0, %1, %cst {dimension_numbers = #tpu.dot_dimension_numbers<[1], [0], [0], [1], [0, 0, 1, 1], [], []>} : vector<8x256xf32>, vector<256x512xf32>, vector<8x512xf32> -> vector<8x512xf32>
    %c0_3 = arith.constant 0 : index
    %c0_4 = arith.constant 0 : index
    %3 = vector.load %arg3[%c0_3, %c0_4] : memref<1x512xf32, #tpu.memory_space<vmem>>, vector<1x512xf32>
    %4 = vector.broadcast %3 : vector<1x512xf32> to vector<8x512xf32>
    %5 = arith.addf %2, %4 : vector<8x512xf32>
    %cst_5 = arith.constant 0.000000e+00 : f32
    %6 = vector.broadcast %cst_5 : f32 to vector<8x512xf32>
    %7 = arith.cmpf ogt, %5, %6 : vector<8x512xf32>
    %cst_6 = arith.constant 0.00999999977 : f32
    %8 = vector.broadcast %cst_6 : f32 to vector<8x512xf32>
    %9 = arith.mulf %8, %5 : vector<8x512xf32>
    %10 = arith.select %7, %5, %9 : vector<8x512xi1>, vector<8x512xf32>
    %c0_7 = arith.constant 0 : index
    %c0_8 = arith.constant 0 : index
    %11 = vector.load %arg4[%c0_7, %c0_8] : memref<512x128xf32, #tpu.memory_space<vmem>>, vector<512x128xf32>
    %cst_9 = arith.constant dense<0.000000e+00> : vector<8x128xf32>
    %12 = tpu.matmul %10, %11, %cst_9 {dimension_numbers = #tpu.dot_dimension_numbers<[1], [0], [0], [1], [0, 0, 1, 1], [], []>} : vector<8x512xf32>, vector<512x128xf32>, vector<8x128xf32> -> vector<8x128xf32>
    %c0_10 = arith.constant 0 : index
    %c0_11 = arith.constant 0 : index
    %13 = vector.load %arg5[%c0_10, %c0_11] : memref<1x128xf32, #tpu.memory_space<vmem>>, vector<1x128xf32>
    %14 = vector.broadcast %13 : vector<1x128xf32> to vector<8x128xf32>
    %15 = arith.addf %12, %14 : vector<8x128xf32>
    %cst_12 = arith.constant 0.000000e+00 : f32
    %16 = vector.broadcast %cst_12 : f32 to vector<8x128xf32>
    %17 = arith.subf %16, %15 : vector<8x128xf32>
    %18 = math.exp %17 : vector<8x128xf32>
    %cst_13 = arith.constant 1.000000e+00 : f32
    %19 = vector.broadcast %cst_13 : f32 to vector<8x128xf32>
    %20 = arith.addf %19, %18 : vector<8x128xf32>
    %21 = tpu.reciprocal %20 : vector<8x128xf32> -> vector<8x128xf32>
    %c0_14 = arith.constant 0 : index
    %c0_15 = arith.constant 0 : index
    %22 = vector.load %arg6[%c0_14, %c0_15] : memref<8x128xf32, #tpu.memory_space<vmem>>, vector<8x128xf32>
    tpu.vector_store %arg6[%c0_14, %c0_15], %21 {strides = array<i32>} : memref<8x128xf32, #tpu.memory_space<vmem>>, vector<8x128xf32>,
    return
  }
  func.func @transform_0(%arg0: i32) -> (i32, i32) {
    %c0_i32 = arith.constant 0 : i32
    %c0_i32_0 = arith.constant 0 : i32
    return %arg0, %c0_i32 : i32, i32
  }
  func.func @transform_1(%arg0: i32) -> (i32, i32) {
    %c0_i32 = arith.constant 0 : i32
    %c0_i32_0 = arith.constant 0 : i32
    %c0_i32_1 = arith.constant 0 : i32
    return %c0_i32, %c0_i32_0 : i32, i32
  }
  func.func @transform_2(%arg0: i32) -> (i32, i32) {
    %c0_i32 = arith.constant 0 : i32
    %c0_i32_0 = arith.constant 0 : i32
    %c0_i32_1 = arith.constant 0 : i32
    return %c0_i32, %c0_i32_0 : i32, i32
  }
  func.func @transform_3(%arg0: i32) -> (i32, i32) {
    %c0_i32 = arith.constant 0 : i32
    %c0_i32_0 = arith.constant 0 : i32
    %c0_i32_1 = arith.constant 0 : i32
    return %c0_i32, %c0_i32_0 : i32, i32
  }
  func.func @transform_4(%arg0: i32) -> (i32, i32) {
    %c0_i32 = arith.constant 0 : i32
    %c0_i32_0 = arith.constant 0 : i32
    %c0_i32_1 = arith.constant 0 : i32
    return %c0_i32, %c0_i32_0 : i32, i32
  }
  func.func @transform_5(%arg0: i32) -> (i32, i32) {
    %c0_i32 = arith.constant 0 : i32
    %c0_i32_0 = arith.constant 0 : i32
    return %arg0, %c0_i32 : i32, i32
  }
}

</mosaic_0001>

<bundles_post_ra>
// kernel: decoder_forward.1
= control target key start
LH: loop header
LB: loop body
LE: loop exit
PB: predicated region body
PF: predicated region fallthrough
CT: control target
= control target key end

     0   :  { %s1435_s1 = inlined_call_operand.vmem [shape: f32[256,512], index: 1, kind: input, shape index: {}]   ;;  %s1436_s0 = inlined_call_operand.vmem [shape: f32[8,256], index: 0, kind: input, shape index: {}]   ;;  %s1437_s3 = inlined_call_operand.vmem [shape: f32[512,128], index: 3, kind: input, shape index: {}]   ;;  %s1438_s2 = inlined_call_operand.vmem [shape: f32[1,512], index: 2, kind: input, shape index: {}]   ;;  %s1439_s4 = inlined_call_operand.vmem [shape: f32[1,128], index: 4, kind: input, shape index: {}]   ;;  %s1440_s5 = inlined_call_operand.vmem [shape: f32[8,128], index: 5, kind: output, shape index: {}]  }
   0x1   :  { %v23_v0 = vld [vmem:[%s1435_s1 + $0x8] sm:$0xff]  ;;  %v25_v2 = vld [vmem:[%s1435_s1 + $0x18] sm:$0xff]  ;;  %v22_v5 = vld [vmem:[%s1435_s1] sm:$0xff] }
   0x2   :  { %v27_v1 = vld [vmem:[%s1435_s1 + $0x28] sm:$0xff]  ;;  %v29_v4 = vld [vmem:[%s1435_s1 + $0x38] sm:$0xff]  ;;  %v26_v6 = vld [vmem:[%s1435_s1 + $0x20] sm:$0xff] }
   0x3   :  { %v618_v3 = vpack.c.bf16 %v27_v1, %v23_v0  ;;  %v682_v7 = vpack.c.bf16 %v29_v4, %v25_v2  ;;  %v620_v8 = vpack.c.bf16 %v26_v6, %v22_v5  ;;  %v24_v9 = vld [vmem:[%s1435_s1 + $0x10] sm:$0xff]  ;;  %v31_v11 = vld [vmem:[%s1435_s1 + $0x48] sm:$0xff]  ;;  %v33_v14 = vld [vmem:[%s1435_s1 + $0x58] sm:$0xff] }
   0x4   :  { %v28_v10 = vld [vmem:[%s1435_s1 + $0x30] sm:$0xff]  ;;  %v35_v13 = vld [vmem:[%s1435_s1 + $0x68] sm:$0xff]  ;;  %v37_v15 = vld [vmem:[%s1435_s1 + $0x78] sm:$0xff] }
   0x5   :  { %619 = vmatprep.subr.bf16.mxu0 %v618_v3  ;;  %v684_v12 = vpack.c.bf16 %v28_v10, %v24_v9  ;;  %683 = vmatprep.subr.bf16.mxu1 %v682_v7  ;;  %v622_v16 = vpack.c.bf16 %v35_v13, %v31_v11  ;;  %v686_v17 = vpack.c.bf16 %v37_v15, %v33_v14  ;;  %v30_v18 = vld [vmem:[%s1435_s1 + $0x40] sm:$0xff]  ;;  %v32_v20 = vld [vmem:[%s1435_s1 + $0x50] sm:$0xff]  ;;  %v39_v23 = vld [vmem:[%s1435_s1 + $0x88] sm:$0xff] }
   0x6   :  { %621 = vmatpush1.bf16.msra.mxu0 %v620_v8  ;;  %v34_v19 = vld [vmem:[%s1435_s1 + $0x60] sm:$0xff]  ;;  %v36_v22 = vld [vmem:[%s1435_s1 + $0x70] sm:$0xff]  ;;  %v43_v24 = vld [vmem:[%s1435_s1 + $0xa8] sm:$0xff] }
   0x7   :  { %685 = vmatpush1.bf16.msra.mxu1 %v684_v12  ;;  %v624_v21 = vpack.c.bf16 %v34_v19, %v30_v18  ;;  %623 = vmatprep.subr.bf16.mxu0 %v622_v16  ;;  %v688_v25 = vpack.c.bf16 %v36_v22, %v32_v20  ;;  %v626_v26 = vpack.c.bf16 %v43_v24, %v39_v23  ;;  %v41_v27 = vld [vmem:[%s1435_s1 + $0x98] sm:$0xff]  ;;  %v38_v29 = vld [vmem:[%s1435_s1 + $0x80] sm:$0xff]  ;;  %v40_v32 = vld [vmem:[%s1435_s1 + $0x90] sm:$0xff] }
   0x8   :  { %687 = vmatprep.subr.bf16.mxu1 %v686_v17  ;;  %v45_v28 = vld [vmem:[%s1435_s1 + $0xb8] sm:$0xff]  ;;  %v42_v31 = vld [vmem:[%s1435_s1 + $0xa0] sm:$0xff]  ;;  %v44_v33 = vld [vmem:[%s1435_s1 + $0xb0] sm:$0xff] }
   0x9   :  { %v690_v30 = vpack.c.bf16 %v45_v28, %v41_v27  ;;  %v628_v34 = vpack.c.bf16 %v42_v31, %v38_v29  ;;  %v47_v35 = vld [vmem:[%s1435_s1 + $0xc8] sm:$0xff]  ;;  %v49_v37 = vld [vmem:[%s1435_s1 + $0xd8] sm:$0xff]  ;;  %v692_v38 = vpack.c.bf16 %v44_v33, %v40_v32  ;;  %v46_v41 = vld [vmem:[%s1435_s1 + $0xc0] sm:$0xff] }
   0xa   :  { %625 = vmatpush1.bf16.msra.mxu0 %v624_v21  ;;  %v51_v36 = vld [vmem:[%s1435_s1 + $0xe8] sm:$0xff]  ;;  %v53_v40 = vld [vmem:[%s1435_s1 + $0xf8] sm:$0xff]  ;;  %v50_v42 = vld [vmem:[%s1435_s1 + $0xe0] sm:$0xff] }
   0xb   :  { %689 = vmatpush1.bf16.msra.mxu1 %v688_v25  ;;  %627 = vmatprep.subr.bf16.mxu0 %v626_v26  ;;  %v630_v39 = vpack.c.bf16 %v51_v36, %v47_v35  ;;  %v694_v43 = vpack.c.bf16 %v53_v40, %v49_v37  ;;  %v48_v44 = vld [vmem:[%s1435_s1 + $0xd0] sm:$0xff]  ;;  %v55_v46 = vld [vmem:[%s1435_s1 + $0x108] sm:$0xff]  ;;  %v57_v48 = vld [vmem:[%s1435_s1 + $0x118] sm:$0xff]  ;;  %v632_v50 = vpack.c.bf16 %v50_v42, %v46_v41 }
   0xc   :  { %691 = vmatprep.subr.bf16.mxu1 %v690_v30  ;;  %v52_v45 = vld [vmem:[%s1435_s1 + $0xf0] sm:$0xff]  ;;  %v59_v47 = vld [vmem:[%s1435_s1 + $0x128] sm:$0xff]  ;;  %v61_v49 = vld [vmem:[%s1435_s1 + $0x138] sm:$0xff] }
   0xd   :  { %v696_v51 = vpack.c.bf16 %v52_v45, %v48_v44  ;;  %v634_v52 = vpack.c.bf16 %v59_v47, %v55_v46  ;;  %v54_v53 = vld [vmem:[%s1435_s1 + $0x100] sm:$0xff]  ;;  %v56_v55 = vld [vmem:[%s1435_s1 + $0x110] sm:$0xff]  ;;  %v698_v56 = vpack.c.bf16 %v61_v49, %v57_v48  ;;  %v63_v58 = vld [vmem:[%s1435_s1 + $0x148] sm:$0xff] }
   0xe   :  { %629 = vmatpush1.bf16.msra.mxu0 %v628_v34  ;;  %v58_v54 = vld [vmem:[%s1435_s1 + $0x120] sm:$0xff]  ;;  %v60_v57 = vld [vmem:[%s1435_s1 + $0x130] sm:$0xff]  ;;  %v67_v59 = vld [vmem:[%s1435_s1 + $0x168] sm:$0xff] }
   0xf   :  { %693 = vmatpush1.bf16.msra.mxu1 %v692_v38  ;;  %631 = vmatprep.subr.bf16.mxu0 %v630_v39  ;;  %v65_v60 = vld [vmem:[%s1435_s1 + $0x158] sm:$0xff]  ;;  %v636_v62 = vpack.c.bf16 %v58_v54, %v54_v53  ;;  %v700_v63 = vpack.c.bf16 %v60_v57, %v56_v55  ;;  %v638_v0 = vpack.c.bf16 %v67_v59, %v63_v58  ;;  %v62_v1 = vld [vmem:[%s1435_s1 + $0x140] sm:$0xff]  ;;  %v64_v3 = vld [vmem:[%s1435_s1 + $0x150] sm:$0xff] }
  0x10   :  { %695 = vmatprep.subr.bf16.mxu1 %v694_v43  ;;  %v69_v61 = vld [vmem:[%s1435_s1 + $0x178] sm:$0xff]  ;;  %v66_v2 = vld [vmem:[%s1435_s1 + $0x160] sm:$0xff]  ;;  %v68_v5 = vld [vmem:[%s1435_s1 + $0x170] sm:$0xff] }
  0x11   :  { %v702_v4 = vpack.c.bf16 %v69_v61, %v65_v60  ;;  %v71_v6 = vld [vmem:[%s1435_s1 + $0x188] sm:$0xff]  ;;  %v73_v8 = vld [vmem:[%s1435_s1 + $0x198] sm:$0xff]  ;;  %v640_v10 = vpack.c.bf16 %v66_v2, %v62_v1  ;;  %v704_v11 = vpack.c.bf16 %v68_v5, %v64_v3  ;;  %v70_v13 = vld [vmem:[%s1435_s1 + $0x180] sm:$0xff] }
  0x12   :  { %633 = vmatpush1.bf16.msra.mxu0 %v632_v50  ;;  %v75_v7 = vld [vmem:[%s1435_s1 + $0x1a8] sm:$0xff]  ;;  %v77_v9 = vld [vmem:[%s1435_s1 + $0x1b8] sm:$0xff]  ;;  %v74_v14 = vld [vmem:[%s1435_s1 + $0x1a0] sm:$0xff] }
  0x13   :  { %697 = vmatpush1.bf16.msra.mxu1 %v696_v51  ;;  %635 = vmatprep.subr.bf16.mxu0 %v634_v52  ;;  %v642_v12 = vpack.c.bf16 %v75_v7, %v71_v6  ;;  %v72_v15 = vld [vmem:[%s1435_s1 + $0x190] sm:$0xff]  ;;  %v706_v16 = vpack.c.bf16 %v77_v9, %v73_v8  ;;  %v79_v18 = vld [vmem:[%s1435_s1 + $0x1c8] sm:$0xff]  ;;  %v81_v20 = vld [vmem:[%s1435_s1 + $0x1d8] sm:$0xff]  ;;  %v644_v22 = vpack.c.bf16 %v74_v14, %v70_v13 }
  0x14   :  { %699 = vmatprep.subr.bf16.mxu1 %v698_v56  ;;  %v76_v17 = vld [vmem:[%s1435_s1 + $0x1b0] sm:$0xff]  ;;  %v83_v19 = vld [vmem:[%s1435_s1 + $0x1e8] sm:$0xff]  ;;  %v85_v21 = vld [vmem:[%s1435_s1 + $0x1f8] sm:$0xff] }
  0x15   :  { %v708_v23 = vpack.c.bf16 %v76_v17, %v72_v15  ;;  %v646_v24 = vpack.c.bf16 %v83_v19, %v79_v18  ;;  %v78_v25 = vld [vmem:[%s1435_s1 + $0x1c0] sm:$0xff]  ;;  %v80_v27 = vld [vmem:[%s1435_s1 + $0x1d0] sm:$0xff]  ;;  %v710_v28 = vpack.c.bf16 %v85_v21, %v81_v20  ;;  %v87_v30 = vld [vmem:[%s1435_s1 + $0x208] sm:$0xff] }
  0x16   :  { %637 = vmatpush1.bf16.msra.mxu0 %v636_v62  ;;  %v82_v26 = vld [vmem:[%s1435_s1 + $0x1e0] sm:$0xff]  ;;  %v84_v29 = vld [vmem:[%s1435_s1 + $0x1f0] sm:$0xff]  ;;  %v91_v31 = vld [vmem:[%s1435_s1 + $0x228] sm:$0xff] }
  0x17   :  { %701 = vmatpush1.bf16.msra.mxu1 %v700_v63  ;;  %639 = vmatprep.subr.bf16.mxu0 %v638_v0  ;;  %v89_v32 = vld [vmem:[%s1435_s1 + $0x218] sm:$0xff]  ;;  %v648_v34 = vpack.c.bf16 %v82_v26, %v78_v25  ;;  %v712_v35 = vpack.c.bf16 %v84_v29, %v80_v27  ;;  %v650_v36 = vpack.c.bf16 %v91_v31, %v87_v30  ;;  %v86_v37 = vld [vmem:[%s1435_s1 + $0x200] sm:$0xff]  ;;  %v88_v39 = vld [vmem:[%s1435_s1 + $0x210] sm:$0xff] }
  0x18   :  { %703 = vmatprep.subr.bf16.mxu1 %v702_v4  ;;  %v93_v33 = vld [vmem:[%s1435_s1 + $0x238] sm:$0xff]  ;;  %v90_v38 = vld [vmem:[%s1435_s1 + $0x220] sm:$0xff]  ;;  %v92_v41 = vld [vmem:[%s1435_s1 + $0x230] sm:$0xff] }
  0x19   :  { %v714_v40 = vpack.c.bf16 %v93_v33, %v89_v32  ;;  %v95_v42 = vld [vmem:[%s1435_s1 + $0x248] sm:$0xff]  ;;  %v97_v44 = vld [vmem:[%s1435_s1 + $0x258] sm:$0xff]  ;;  %v652_v46 = vpack.c.bf16 %v90_v38, %v86_v37  ;;  %v716_v47 = vpack.c.bf16 %v92_v41, %v88_v39  ;;  %v94_v49 = vld [vmem:[%s1435_s1 + $0x240] sm:$0xff] }
  0x1a   :  { %641 = vmatpush1.bf16.msra.mxu0 %v640_v10  ;;  %v99_v43 = vld [vmem:[%s1435_s1 + $0x268] sm:$0xff]  ;;  %v101_v45 = vld [vmem:[%s1435_s1 + $0x278] sm:$0xff]  ;;  %v98_v50 = vld [vmem:[%s1435_s1 + $0x260] sm:$0xff] }
  0x1b   :  { %705 = vmatpush1.bf16.msra.mxu1 %v704_v11  ;;  %643 = vmatprep.subr.bf16.mxu0 %v642_v12  ;;  %v654_v48 = vpack.c.bf16 %v99_v43, %v95_v42  ;;  %v96_v51 = vld [vmem:[%s1435_s1 + $0x250] sm:$0xff]  ;;  %v718_v52 = vpack.c.bf16 %v101_v45, %v97_v44  ;;  %v103_v54 = vld [vmem:[%s1435_s1 + $0x288] sm:$0xff]  ;;  %v105_v56 = vld [vmem:[%s1435_s1 + $0x298] sm:$0xff]  ;;  %v656_v58 = vpack.c.bf16 %v98_v50, %v94_v49 }
  0x1c   :  { %707 = vmatprep.subr.bf16.mxu1 %v706_v16  ;;  %v100_v53 = vld [vmem:[%s1435_s1 + $0x270] sm:$0xff]  ;;  %v107_v55 = vld [vmem:[%s1435_s1 + $0x2a8] sm:$0xff]  ;;  %v109_v57 = vld [vmem:[%s1435_s1 + $0x2b8] sm:$0xff] }
  0x1d   :  { %v720_v59 = vpack.c.bf16 %v100_v53, %v96_v51  ;;  %v658_v60 = vpack.c.bf16 %v107_v55, %v103_v54  ;;  %v102_v61 = vld [vmem:[%s1435_s1 + $0x280] sm:$0xff]  ;;  %v104_v63 = vld [vmem:[%s1435_s1 + $0x290] sm:$0xff]  ;;  %v722_v0 = vpack.c.bf16 %v109_v57, %v105_v56  ;;  %v111_v2 = vld [vmem:[%s1435_s1 + $0x2c8] sm:$0xff] }
  0x1e   :  { %645 = vmatpush1.bf16.msra.mxu0 %v644_v22  ;;  %v106_v62 = vld [vmem:[%s1435_s1 + $0x2a0] sm:$0xff]  ;;  %v108_v1 = vld [vmem:[%s1435_s1 + $0x2b0] sm:$0xff]  ;;  %v115_v3 = vld [vmem:[%s1435_s1 + $0x2e8] sm:$0xff] }
  0x1f   :  { %709 = vmatpush1.bf16.msra.mxu1 %v708_v23  ;;  %647 = vmatprep.subr.bf16.mxu0 %v646_v24  ;;  %v113_v4 = vld [vmem:[%s1435_s1 + $0x2d8] sm:$0xff]  ;;  %v660_v6 = vpack.c.bf16 %v106_v62, %v102_v61  ;;  %v110_v7 = vld [vmem:[%s1435_s1 + $0x2c0] sm:$0xff]  ;;  %v724_v8 = vpack.c.bf16 %v108_v1, %v104_v63  ;;  %v662_v9 = vpack.c.bf16 %v115_v3, %v111_v2  ;;  %v112_v11 = vld [vmem:[%s1435_s1 + $0x2d0] sm:$0xff] }
  0x20   :  { %711 = vmatprep.subr.bf16.mxu1 %v710_v28  ;;  %v117_v5 = vld [vmem:[%s1435_s1 + $0x2f8] sm:$0xff]  ;;  %v114_v10 = vld [vmem:[%s1435_s1 + $0x2e0] sm:$0xff]  ;;  %v116_v12 = vld [vmem:[%s1435_s1 + $0x2f0] sm:$0xff] }
  0x21   :  { %v726_v13 = vpack.c.bf16 %v117_v5, %v113_v4  ;;  %v119_v14 = vld [vmem:[%s1435_s1 + $0x308] sm:$0xff]  ;;  %v121_v17 = vld [vmem:[%s1435_s1 + $0x318] sm:$0xff]  ;;  %v664_v19 = vpack.c.bf16 %v114_v10, %v110_v7  ;;  %v728_v20 = vpack.c.bf16 %v116_v12, %v112_v11  ;;  %v118_v22 = vld [vmem:[%s1435_s1 + $0x300] sm:$0xff] }
  0x22   :  { %649 = vmatpush1.bf16.msra.mxu0 %v648_v34  ;;  %v123_v15 = vld [vmem:[%s1435_s1 + $0x328] sm:$0xff]  ;;  %v125_v18 = vld [vmem:[%s1435_s1 + $0x338] sm:$0xff]  ;;  %v122_v23 = vld [vmem:[%s1435_s1 + $0x320] sm:$0xff] }
  0x23   :  { %713 = vmatpush1.bf16.msra.mxu1 %v712_v35  ;;  %651 = vmatprep.subr.bf16.mxu0 %v650_v36  ;;  %v21_v16 = vld [vmem:[%s1436_s0 + $0x8] sm:$0xff]  ;;  %v666_v21 = vpack.c.bf16 %v123_v15, %v119_v14  ;;  %v120_v24 = vld [vmem:[%s1435_s1 + $0x310] sm:$0xff]  ;;  %v730_v25 = vpack.c.bf16 %v125_v18, %v121_v17  ;;  %v129_v29 = vld [vmem:[%s1435_s1 + $0x358] sm:$0xff]  ;;  %v668_v31 = vpack.c.bf16 %v122_v23, %v118_v22 }
  0x24   :  { %715 = vmatprep.subr.bf16.mxu1 %v714_v40  ;;  %236 = vmatprep.mubr.f32.mxu0 %v21_v16  ;;  %v124_v26 = vld [vmem:[%s1435_s1 + $0x330] sm:$0xff]  ;;  %v127_v27 = vld [vmem:[%s1435_s1 + $0x348] sm:$0xff]  ;;  %v133_v30 = vld [vmem:[%s1435_s1 + $0x378] sm:$0xff] }
  0x25   :  { %307 = vmatprep.mubr.f32.mxu1 %v21_v16  ;;  %v131_v28 = vld [vmem:[%s1435_s1 + $0x368] sm:$0xff]  ;;  %v732_v32 = vpack.c.bf16 %v124_v26, %v120_v24  ;;  %v126_v34 = vld [vmem:[%s1435_s1 + $0x340] sm:$0xff]  ;;  %v128_v36 = vld [vmem:[%s1435_s1 + $0x350] sm:$0xff]  ;;  %v734_v37 = vpack.c.bf16 %v133_v30, %v129_v29 }
  0x26   :  { %653 = vmatpush1.bf16.msra.mxu0 %v652_v46  ;;  %v670_v33 = vpack.c.bf16 %v131_v28, %v127_v27  ;;  %v130_v35 = vld [vmem:[%s1435_s1 + $0x360] sm:$0xff]  ;;  %v132_v38 = vld [vmem:[%s1435_s1 + $0x370] sm:$0xff]  ;;  %v135_v39 = vld [vmem:[%s1435_s1 + $0x388] sm:$0xff] }
  0x27   :  { %717 = vmatpush1.bf16.msra.mxu1 %v716_v47  ;;  %655 = vmatprep.subr.bf16.mxu0 %v654_v48  ;;  %v139_v40 = vld [vmem:[%s1435_s1 + $0x3a8] sm:$0xff]  ;;  %v137_v41 = vld [vmem:[%s1435_s1 + $0x398] sm:$0xff]  ;;  %v672_v43 = vpack.c.bf16 %v130_v35, %v126_v34  ;;  %v736_v44 = vpack.c.bf16 %v132_v38, %v128_v36  ;;  %v134_v46 = vld [vmem:[%s1435_s1 + $0x380] sm:$0xff] }
  0x28   :  { %719 = vmatprep.subr.bf16.mxu1 %v718_v52  ;;  %v141_v42 = vld [vmem:[%s1435_s1 + $0x3b8] sm:$0xff]  ;;  %v674_v45 = vpack.c.bf16 %v139_v40, %v135_v39  ;;  %v138_v47 = vld [vmem:[%s1435_s1 + $0x3a0] sm:$0xff]  ;;  %v136_v48 = vld [vmem:[%s1435_s1 + $0x390] sm:$0xff] }
  0x29   :  { %v738_v49 = vpack.c.bf16 %v141_v42, %v137_v41  ;;  %v140_v50 = vld [vmem:[%s1435_s1 + $0x3b0] sm:$0xff]  ;;  %v143_v51 = vld [vmem:[%s1435_s1 + $0x3c8] sm:$0xff]  ;;  %v145_v53 = vld [vmem:[%s1435_s1 + $0x3d8] sm:$0xff]  ;;  %v676_v55 = vpack.c.bf16 %v138_v47, %v134_v46 }
  0x2a   :  { %657 = vmatpush1.bf16.msra.mxu0 %v656_v58  ;;  %v147_v52 = vld [vmem:[%s1435_s1 + $0x3e8] sm:$0xff]  ;;  %v149_v54 = vld [vmem:[%s1435_s1 + $0x3f8] sm:$0xff]  ;;  %v740_v56 = vpack.c.bf16 %v140_v50, %v136_v48  ;;  %v142_v58 = vld [vmem:[%s1435_s1 + $0x3c0] sm:$0xff] }
  0x2b   :  { %721 = vmatpush1.bf16.msra.mxu1 %v720_v59  ;;  %659 = vmatprep.subr.bf16.mxu0 %v658_v60  ;;  %v678_v57 = vpack.c.bf16 %v147_v52, %v143_v51  ;;  %v146_v59 = vld [vmem:[%s1435_s1 + $0x3e0] sm:$0xff]  ;;  %v144_v60 = vld [vmem:[%s1435_s1 + $0x3d0] sm:$0xff]  ;;  %v742_v61 = vpack.c.bf16 %v149_v54, %v145_v53  ;;  %v375_v2 = vld [vmem:[%s1437_s3 + $0x188] sm:$0xff] }
  0x2c   :  { %723 = vmatprep.subr.bf16.mxu1 %v722_v0  ;;  %v148_v62 = vld [vmem:[%s1435_s1 + $0x3f0] sm:$0xff]  ;;  %v342_v63 = vld [vmem:[%s1437_s3 + $0x80] sm:$0xff]  ;;  %v343_v0 = vld [vmem:[%s1437_s3 + $0x88] sm:$0xff]  ;;  %v680_v3 = vpack.c.bf16 %v146_v59, %v142_v58 }
  0x2d   :  { %v374_v1 = vld [vmem:[%s1437_s3 + $0x180] sm:$0xff]  ;;  %v744_v4 = vpack.c.bf16 %v148_v62, %v144_v60  ;;  %v746_v5 = vpack.c.bf16 %v343_v0, %v342_v63  ;;  %v327_v7 = vld [vmem:[%s1437_s3 + $0x8] sm:$0xff]  ;;  %v344_v11 = vld [vmem:[%s1437_s3 + $0x90] sm:$0xff] }
  0x2e   :  { %661 = vmatpush1.bf16.msra.mxu0 %v660_v6  ;;  %v326_v6 = vld [vmem:[%s1437_s3] sm:$0xff]  ;;  %v359_v10 = vld [vmem:[%s1437_s3 + $0x108] sm:$0xff]  ;;  %v345_v12 = vld [vmem:[%s1437_s3 + $0x98] sm:$0xff] }
  0x2f   :  { %725 = vmatpush1.bf16.msra.mxu1 %v724_v8  ;;  %663 = vmatprep.subr.bf16.mxu0 %v662_v9  ;;  %v358_v8 = vld [vmem:[%s1437_s3 + $0x100] sm:$0xff]  ;;  %v778_v9 = vpack.c.bf16 %v375_v2, %v374_v1  ;;  %v377_v14 = vld [vmem:[%s1437_s3 + $0x198] sm:$0xff]  ;;  %v748_v16 = vpack.c.bf16 %v327_v7, %v326_v6  ;;  %v750_v18 = vpack.c.bf16 %v345_v12, %v344_v11  ;;  %v379_v27 = vld [vmem:[%s1437_s3 + $0x1a8] sm:$0xff] }
  0x30   :  { %727 = vmatprep.subr.bf16.mxu1 %v726_v13  ;;  %v376_v13 = vld [vmem:[%s1437_s3 + $0x190] sm:$0xff]  ;;  %v20_v15 = vld [vmem:[%s1436_s0] sm:$0xff]  ;;  %v780_v17 = vpack.c.bf16 %v359_v10, %v358_v8  ;;  %v361_v23 = vld [vmem:[%s1437_s3 + $0x118] sm:$0xff] }
  0x31   :  { %v782_v22 = vpack.c.bf16 %v377_v14, %v376_v13  ;;  %v346_v24 = vld [vmem:[%s1437_s3 + $0xa0] sm:$0xff]  ;;  %v363_v35 = vld [vmem:[%s1437_s3 + $0x128] sm:$0xff]  ;;  %v348_v36 = vld [vmem:[%s1437_s3 + $0xb0] sm:$0xff] }
  0x32   :  { %665 = vmatpush1.bf16.msra.mxu0 %v664_v19  ;;  %v328_v19 = vld [vmem:[%s1437_s3 + $0x10] sm:$0xff]  ;;  %v378_v26 = vld [vmem:[%s1437_s3 + $0x1a0] sm:$0xff]  ;;  %v381_v39 = vld [vmem:[%s1437_s3 + $0x1b8] sm:$0xff] }
  0x33   :  { %729 = vmatpush1.bf16.msra.mxu1 %v728_v20  ;;  %667 = vmatprep.subr.bf16.mxu0 %v666_v21  ;;  %v329_v20 = vld [vmem:[%s1437_s3 + $0x18] sm:$0xff]  ;;  %v360_v21 = vld [vmem:[%s1437_s3 + $0x110] sm:$0xff]  ;;  %v786_v34 = vpack.c.bf16 %v379_v27, %v378_v26  ;;  %v350_v48 = vld [vmem:[%s1437_s3 + $0xc0] sm:$0xff] }
  0x34   :  { %731 = vmatprep.subr.bf16.mxu1 %v730_v25  ;;  %v347_v25 = vld [vmem:[%s1437_s3 + $0xa8] sm:$0xff]  ;;  %v752_v28 = vpack.c.bf16 %v329_v20, %v328_v19  ;;  %v784_v29 = vpack.c.bf16 %v361_v23, %v360_v21  ;;  %v380_v38 = vld [vmem:[%s1437_s3 + $0x1b0] sm:$0xff]  ;;  %v365_v47 = vld [vmem:[%s1437_s3 + $0x138] sm:$0xff] }
  0x35   :  { %v754_v30 = vpack.c.bf16 %v347_v25, %v346_v24  ;;  %v790_v46 = vpack.c.bf16 %v381_v39, %v380_v38  ;;  %v382_v50 = vld [vmem:[%s1437_s3 + $0x1c0] sm:$0xff]  ;;  %v383_v51 = vld [vmem:[%s1437_s3 + $0x1c8] sm:$0xff]  ;;  %v352_v60 = vld [vmem:[%s1437_s3 + $0xd0] sm:$0xff] }
  0x36   :  { %669 = vmatpush1.bf16.msra.mxu0 %v668_v31  ;;  %v330_v31 = vld [vmem:[%s1437_s3 + $0x20] sm:$0xff]  ;;  %v794_v58 = vpack.c.bf16 %v383_v51, %v382_v50  ;;  %v367_v59 = vld [vmem:[%s1437_s3 + $0x148] sm:$0xff]  ;;  %v384_v62 = vld [vmem:[%s1437_s3 + $0x1d0] sm:$0xff] }
  0x37   :  { %733 = vmatpush1.bf16.msra.mxu1 %v732_v32  ;;  %671 = vmatprep.subr.bf16.mxu0 %v670_v33  ;;  %v331_v32 = vld [vmem:[%s1437_s3 + $0x28] sm:$0xff]  ;;  %v362_v33 = vld [vmem:[%s1437_s3 + $0x120] sm:$0xff]  ;;  %v385_v63 = vld [vmem:[%s1437_s3 + $0x1d8] sm:$0xff] }
  0x38   :  { %735 = vmatprep.subr.bf16.mxu1 %v734_v37  ;;  %v349_v37 = vld [vmem:[%s1437_s3 + $0xb8] sm:$0xff]  ;;  %v756_v40 = vpack.c.bf16 %v331_v32, %v330_v31  ;;  %v788_v41 = vpack.c.bf16 %v363_v35, %v362_v33  ;;  %v368_v6 = vld [vmem:[%s1437_s3 + $0x150] sm:$0xff]  ;;  %v354_v10 = vld [vmem:[%s1437_s3 + $0xe0] sm:$0xff] }
  0x39   :  { %v758_v42 = vpack.c.bf16 %v349_v37, %v348_v36  ;;  %v369_v7 = vld [vmem:[%s1437_s3 + $0x158] sm:$0xff]  ;;  %v355_v11 = vld [vmem:[%s1437_s3 + $0xe8] sm:$0xff]  ;;  %v386_v12 = vld [vmem:[%s1437_s3 + $0x1e0] sm:$0xff] }
  0x3a   :  { %673 = vmatpush1.bf16.msra.mxu0 %v672_v43  ;;  %v332_v43 = vld [vmem:[%s1437_s3 + $0x30] sm:$0xff]  ;;  %v770_v13 = vpack.c.bf16 %v355_v11, %v354_v10  ;;  %v387_v14 = vld [vmem:[%s1437_s3 + $0x1e8] sm:$0xff]  ;;  %v370_v19 = vld [vmem:[%s1437_s3 + $0x160] sm:$0xff] }
  0x3b   :  { %737 = vmatpush1.bf16.msra.mxu1 %v736_v44  ;;  %675 = vmatprep.subr.bf16.mxu0 %v674_v45  ;;  %v333_v44 = vld [vmem:[%s1437_s3 + $0x38] sm:$0xff]  ;;  %v364_v45 = vld [vmem:[%s1437_s3 + $0x130] sm:$0xff]  ;;  %v371_v20 = vld [vmem:[%s1437_s3 + $0x168] sm:$0xff] }
  0x3c   :  { %739 = vmatprep.subr.bf16.mxu1 %v738_v49  ;;  %v351_v49 = vld [vmem:[%s1437_s3 + $0xc8] sm:$0xff]  ;;  %v760_v52 = vpack.c.bf16 %v333_v44, %v332_v43  ;;  %v792_v53 = vpack.c.bf16 %v365_v47, %v364_v45  ;;  %v804_v21 = vpack.c.bf16 %v371_v20, %v370_v19  ;;  %v357_v23 = vld [vmem:[%s1437_s3 + $0xf8] sm:$0xff]  ;;  %v388_v24 = vld [vmem:[%s1437_s3 + $0x1f0] sm:$0xff] }
  0x3d   :  { %v762_v54 = vpack.c.bf16 %v351_v49, %v350_v48  ;;  %v389_v26 = vld [vmem:[%s1437_s3 + $0x1f8] sm:$0xff]  ;;  %v340_v27 = vld [vmem:[%s1437_s3 + $0x70] sm:$0xff]  ;;  %v150_v37 = vld [vmem:[%s1438_s2] sm:$0xf] }
  0x3e   :  { %677 = vmatpush1.bf16.msra.mxu0 %v676_v55  ;;  %v334_v55 = vld [vmem:[%s1437_s3 + $0x40] sm:$0xff]  ;;  %v372_v31 = vld [vmem:[%s1437_s3 + $0x170] sm:$0xff]  ;;  %v373_v32 = vld [vmem:[%s1437_s3 + $0x178] sm:$0xff] }
  0x3f   :  { %741 = vmatpush1.bf16.msra.mxu1 %v740_v56  ;;  %679 = vmatprep.subr.bf16.mxu0 %v678_v57  ;;  %v335_v56 = vld [vmem:[%s1437_s3 + $0x48] sm:$0xff]  ;;  %v366_v57 = vld [vmem:[%s1437_s3 + $0x140] sm:$0xff]  ;;  %v808_v33 = vpack.c.bf16 %v373_v32, %v372_v31 }
  0x40   :  { %743 = vmatprep.subr.bf16.mxu1 %v742_v61  ;;  %v353_v61 = vld [vmem:[%s1437_s3 + $0xd8] sm:$0xff]  ;;  %v764_v0 = vpack.c.bf16 %v335_v56, %v334_v55  ;;  %v796_v1 = vpack.c.bf16 %v367_v59, %v366_v57 }
  0x41   :  { %v766_v2 = vpack.c.bf16 %v353_v61, %v352_v60 }
  0x42   :  { %681 = vmatpush1.bf16.msra.mxu0 %v680_v3  ;;  %v336_v3 = vld [vmem:[%s1437_s3 + $0x50] sm:$0xff] }
  0x43   :  { %745 = vmatpush1.bf16.msra.mxu1 %v744_v4  ;;  %747 = vmatprep.subr.bf16.mxu0 %v746_v5  ;;  %v337_v4 = vld [vmem:[%s1437_s3 + $0x58] sm:$0xff]  ;;  %v798_v5 = vpack.c.bf16 %v385_v63, %v384_v62  ;;  %v547_v63 = vld [vmem:[%s1439_s4] ss:$0 sm:$0xff] }
  0x44   :  { %779 = vmatprep.subr.bf16.mxu1 %v778_v9  ;;  %v768_v8 = vpack.c.bf16 %v337_v4, %v336_v3  ;;  %v800_v9 = vpack.c.bf16 %v369_v7, %v368_v6 }
  0x45   :  { %237 = vmatmul.mubr.f32.vlgmr.msra.gmra.mrb[0].mxu0 %v20_v15 }
  0x46   :  { %308 = vmatmul.mubr.f32.vlgmr.msra.gmra.mrb[0].mxu1 %v20_v15  ;;  %749 = vmatpush3.bf16.msra.mxu0 %v748_v16  ;;  %v338_v15 = vld [vmem:[%s1437_s3 + $0x60] sm:$0xff]  ;;  %v339_v16 = vld [vmem:[%s1437_s3 + $0x68] sm:$0xff] }
  0x47   :  { %781 = vmatpush3.bf16.msra.mxu1 %v780_v17  ;;  %751 = vmatprep.subr.bf16.mxu0 %v750_v18  ;;  %v802_v17 = vpack.c.bf16 %v387_v14, %v386_v12  ;;  %v772_v18 = vpack.c.bf16 %v339_v16, %v338_v15 }
  0x48   :  { %783 = vmatprep.subr.bf16.mxu1 %v782_v22  ;;  %v356_v22 = vld [vmem:[%s1437_s3 + $0xf0] sm:$0xff] }
  0x49   :  { %v774_v25 = vpack.c.bf16 %v357_v23, %v356_v22 }
  0x4a   :  { %753 = vmatpush3.bf16.msra.mxu0 %v752_v28  ;;  %v341_v28 = vld [vmem:[%s1437_s3 + $0x78] sm:$0xff] }
  0x4b   :  { %785 = vmatpush3.bf16.msra.mxu1 %v784_v29  ;;  %755 = vmatprep.subr.bf16.mxu0 %v754_v30  ;;  %v806_v29 = vpack.c.bf16 %v389_v26, %v388_v24  ;;  %v776_v30 = vpack.c.bf16 %v341_v28, %v340_v27 }
  0x4c   :  { %787 = vmatprep.subr.bf16.mxu1 %v786_v34  ;;  %v152_v34 = vlaneseq }
  0x4e   :  { %757 = vmatpush3.bf16.msra.mxu0 %v756_v40  ;;  %v153_v35 = vshrl.u32 %v152_v34, 7 }
  0x4f   :  { %789 = vmatpush3.bf16.msra.mxu1 %v788_v41  ;;  %759 = vmatprep.subr.bf16.mxu0 %v758_v42 }
  0x50   :  { %791 = vmatprep.subr.bf16.mxu1 %v790_v46  ;;  %v154_v36 = vsub.s32 0, %v153_v35  ;;  %v162_v38 = vsub.s32 2, %v153_v35  ;;  %v158_v39 = vsub.s32 1, %v153_v35  ;;  %v166_v40 = vsub.s32 3, %v153_v35 }
  0x52   :  { %761 = vmatpush3.bf16.msra.mxu0 %v760_v52  ;;  %v155_v41 = vrot.slane %v150_v37, %v154_v36  ;;  %v163_v42 = vrot.slane %v150_v37, %v162_v38  ;;  %v159_v43 = vrot.slane %v150_v37, %v158_v39  ;;  %v167_v44 = vrot.slane %v150_v37, %v166_v40 }
  0x53   :  { %793 = vmatpush3.bf16.msra.mxu1 %v792_v53  ;;  %763 = vmatprep.subr.bf16.mxu0 %v762_v54 }
  0x54   :  { %795 = vmatprep.subr.bf16.mxu1 %v794_v58 }
  0x56   :  { %765 = vmatpush3.bf16.msra.mxu0 %v764_v0 }
  0x57   :  { %797 = vmatpush3.bf16.msra.mxu1 %v796_v1  ;;  %767 = vmatprep.subr.bf16.mxu0 %v766_v2 }
  0x58   :  { %799 = vmatprep.subr.bf16.mxu1 %v798_v5 }
  0x5a   :  { %769 = vmatpush3.bf16.msra.mxu0 %v768_v8 }
  0x5b   :  { %801 = vmatpush3.bf16.msra.mxu1 %v800_v9  ;;  %771 = vmatprep.subr.bf16.mxu0 %v770_v13 }
  0x5c   :  { %803 = vmatprep.subr.bf16.mxu1 %v802_v17 }
  0x5e   :  { %773 = vmatpush3.bf16.msra.mxu0 %v772_v18 }
  0x5f   :  { %805 = vmatpush3.bf16.msra.mxu1 %v804_v21  ;;  %775 = vmatprep.subr.bf16.mxu0 %v774_v25 }
  0x60   :  { %807 = vmatprep.subr.bf16.mxu1 %v806_v29 }
  0x62   :  { %777 = vmatpush3.bf16.msra.mxu0 %v776_v30 }
  0x63   :  { %809 = vmatpush3.bf16.msra.mxu1 %v808_v33 }
 0x118   :  { %v238_v45 = vpop.f32.mrb[0].mxu0 }
 0x119   :  { %v239_v46 = vadd.f32 %v238_v45, %v155_v41  ;;  %v309_v47 = vpop.f32.mrb[0].mxu1  ;;  %v240_v48 = vpop.f32.mrb[1].mxu0 }
 0x11a   :  { %v310_v49 = vadd.f32 %v309_v47, %v163_v42  ;;  %v241_v50 = vadd.f32 %v240_v48, %v159_v43  ;;  %v311_v51 = vpop.f32.mrb[1].mxu1 }
 0x11b   :  { %v318_v52 = vmul.f32 0.01, %v239_v46  ;;  %v312_v53 = vadd.f32 %v311_v51, %v167_v44  ;;  %vm314_vm0 = vcmp.gt.f32.partialorder %v239_v46, 0.0 }
 0x11c   :  { %v320_v54 = vmul.f32 0.01, %v310_v49  ;;  %v319_v55 = vmul.f32 0.01, %v241_v50  ;;  %vm315_vm1 = vcmp.gt.f32.partialorder %v241_v50, 0.0  ;;  %vm316_vm2 = vcmp.gt.f32.partialorder %v310_v49, 0.0 }
 0x11d   :  { %v321_v56 = vmul.f32 0.01, %v312_v53  ;;  %vm317_vm3 = vcmp.gt.f32.partialorder %v312_v53, 0.0  ;;  %v322_v59 = vsel %vm314_vm0, %v239_v46, %v318_v52 }
 0x11e   :  { %v323_v57 = vsel %vm315_vm1, %v241_v50, %v319_v55  ;;  %v324_v60 = vsel %vm316_vm2, %v310_v49, %v320_v54 }
 0x11f   :  { %461 = vmatprep.mubr.f32.mxu0 %v323_v57  ;;  %v325_v58 = vsel %vm317_vm3, %v312_v53, %v321_v56 }
 0x120   :  { %531 = vmatprep.mubr.f32.mxu1 %v325_v58  ;;  %462 = vmatmul.mubr.f32.vlgmr.msra.gmra.mrb[2].mxu0 %v322_v59 }
 0x121   :  { %532 = vmatmul.mubr.f32.vlgmr.msra.gmra.mrb[2].mxu1 %v324_v60 }
 0x1f3   :  { %v580_v61 = vpop.f32.mrb[2].mxu0 }
 0x1f4   :  { %v615_v62 = vpop.f32.mrb[2].mxu1  ;;  %v581_v0 = vpop.f32.mrb[3].mxu0 }
 0x1f5   :  { %v582_v1 = vadd.f32 %v581_v0, %v580_v61  ;;  %v616_v2 = vpop.f32.mrb[3].mxu1 }
 0x1f6   :  { %v617_v3 = vadd.f32 %v616_v2, %v615_v62 }
 0x1f7   :  { %v464_v4 = vadd.f32 %v582_v1, %v547_v63 }
 0x1f9   :  { %v534_v5 = vadd.f32 %v617_v3, %v464_v4 }
 0x1fb   :  { %v537_v6 = vsub.f32 0.0, %v534_v5 }
 0x1fd   :  { %v538_v7 = vmul.f32 1.442695, %v537_v6 }
 0x1ff   :  { %810 = vpow2.f32 %v538_v7 }
 0x209   :  { %v811_v8 = vpop.eup %810 }
 0x20a   :  { %v540_v9 = vadd.f32 1.0, %v811_v8 }
 0x20c   :  { %812 = vrcp.f32 %v540_v9 }
 0x216   :  { %v813_v10 = vpop.eup %812 }
 0x217   :  { %542 = vst [vmem:[%s1440_s5] sm:$0xff] %v813_v10 }

</bundles_post_ra>
